<compile_context>
chip_gen: v5e
topology: v5e:2x2
jax: 0.10.0
libtpu: 0.0.40
codegen_flags: <defaults>
</compile_context>

<pallas_src>
import jax
import jax.numpy as jnp
from jax.experimental import pallas as pl
from jax.experimental.pallas import tpu as pltpu


def _round_up(x, m):
    return (x + m - 1) // m * m


def _make_sa_kernel(n_layers, bt, n):
    """Per-grid-step: MLP chain (matmul + add + ReLU) + masked max pool."""

    def kernel(x_ref, mask_ref, w_ref, shift_ref, out_ref):
        c = x_ref.shape[-1]
        # Merge the batch tile into the matmul M dimension (layout-free:
        # n is padded to a multiple of 8 sublanes in the wrapper).
        h = x_ref[...].reshape(bt * n, c)
        for i in range(n_layers):
            # BN scale is folded into the weights; conv bias + BN shift is a
            # single add, so the epilogue is just add + max (ReLU).
            y = jnp.dot(h.astype(w_ref.dtype), w_ref[i],
                        preferred_element_type=jnp.float32)
            h = jnp.maximum(y + shift_ref[i:i + 1, :], 0.0)
        h = h.reshape(bt, n, c)
        neg = jnp.finfo(jnp.float32).min
        # One vsel per element instead of two muls (and no inf*0 NaN risk).
        h_masked = jnp.where(mask_ref[...] != 0.0, h, neg)
        out_ref[...] = jnp.max(h_masked, axis=1, keepdims=True)  # [bt, 1, c]

    return kernel


def pointnet_set_abstraction(xyz, points, mask, layer_params, *,
                             group_all=True, compute_dtype=jnp.float32,
                             batch_tile=None):
    """PointNetSetAbstraction.forward with group_all=True.

    xyz:    [B, 3, N] float32
    points: [B, D, N] float32 or None
    mask:   [B, 1, N, 1] float32 (1.0 valid, 0.0 padded)
    layer_params: list of dicts with 'weight' [Cout,Cin], 'bias', 'gamma',
                  'beta', 'mean', 'var' (eval-mode BN running stats).
    compute_dtype: matmul input dtype (use jnp.bfloat16 on v6e/v7x; the
                   accumulate / affine / mask / max stay float32).
    Returns (new_xyz [B, 3, 1], new_points [B, C_last, 1]).
    """
    if not group_all:
        # TODO(synk): group_all=False path not implemented (see module header).
        raise NotImplementedError("group_all=False is not supported")

    B, _, N = xyz.shape
    xyz_bnc = jnp.transpose(xyz, (0, 2, 1))             # [B, N, 3]
    new_xyz = jnp.mean(xyz_bnc, axis=1, keepdims=True)  # [B, 1, 3]
    grouped = xyz_bnc - new_xyz                         # [B, N, 3]
    if points is not None:
        feats = jnp.concatenate(
            [grouped, jnp.transpose(points, (0, 2, 1))], axis=-1)
    else:
        feats = grouped
    feats = feats.astype(jnp.float32)                   # [B, N, Cin]
    mask_bn1 = mask[:, 0].astype(jnp.float32)           # [B, N, 1]

    n_layers = len(layer_params)
    c_in = feats.shape[-1]
    c_outs = [int(lp["weight"].shape[0]) for lp in layer_params]
    c_last = c_outs[-1]
    # Lane-dense channel padding: every activation / weight / output tile uses
    # full 128-wide lanes, and the output store is an unmasked vst.
    c_pad = _round_up(max([c_in] + c_outs), 128)
    n_pad = _round_up(N, 8)

    # Fold conv bias + eval-mode BN into (W', shift):  y = x @ W' + shift.
    eps = 1e-5
    w_stack = jnp.zeros((n_layers, c_pad, c_pad), jnp.float32)
    shift_stack = jnp.zeros((n_layers, c_pad), jnp.float32)
    last_c = c_in
    for i, lp in enumerate(layer_params):
        scale = lp["gamma"] / jnp.sqrt(lp["var"] + eps)                   # [Cout]
        w_fold = jnp.transpose(lp["weight"]).astype(jnp.float32) * scale[None, :]
        shift = (lp["bias"] - lp["mean"]) * scale + lp["beta"]            # [Cout]
        w_stack = w_stack.at[i, :last_c, :c_outs[i]].set(w_fold)
        shift_stack = shift_stack.at[i, :c_outs[i]].set(shift.astype(jnp.float32))
        last_c = c_outs[i]
    w_stack = w_stack.astype(compute_dtype)

    # Zero-pad N (sublanes) and C (lanes); padded points get mask 0 and padded
    # channels stay exactly 0 through the whole MLP chain.
    feats_p = jnp.zeros((B, n_pad, c_pad), compute_dtype)
    feats_p = feats_p.at[:, :N, :c_in].set(feats.astype(compute_dtype))
    mask_p = jnp.zeros((B, n_pad, 1), jnp.float32).at[:, :N, :].set(mask_bn1)

    # Batch tile: fill the matmul M dimension (target ~256 rows) while keeping
    # grid extent >= 2 (v7x has 2 TensorCores) and a bounded VMEM footprint.
    if batch_tile is None:
        bt = max(1, min(B, 256 // n_pad)) if n_pad < 256 else 1
        if B >= 2:
            bt = min(bt, (B + 1) // 2)
        itemsize = jnp.dtype(compute_dtype).itemsize
        # double-buffered input block + unrolled f32 layer intermediates
        per_b = n_pad * c_pad * (2 * itemsize + 4 * (n_layers + 1))
        bt = max(1, min(bt, (24 * 1024 * 1024) // max(per_b, 1)))
    else:
        bt = int(batch_tile)
    b_pad = _round_up(B, bt)
    if b_pad != B:
        feats_p = jnp.pad(feats_p, ((0, b_pad - B), (0, 0), (0, 0)))
        mask_p = jnp.pad(mask_p, ((0, b_pad - B), (0, 0), (0, 0)))

    pooled = pl.pallas_call(
        _make_sa_kernel(n_layers, bt, n_pad),
        grid=(b_pad // bt,),
        in_specs=[
            pl.BlockSpec((bt, n_pad, c_pad), lambda b: (b, 0, 0)),       # feats
            pl.BlockSpec((bt, n_pad, 1), lambda b: (b, 0, 0)),           # mask
            # Constant block index -> fetched once, stays resident in VMEM.
            pl.BlockSpec((n_layers, c_pad, c_pad), lambda b: (0, 0, 0)),  # weights
            pl.BlockSpec((n_layers, c_pad), lambda b: (0, 0)),            # shifts
        ],
        out_specs=pl.BlockSpec((bt, 1, c_pad), lambda b: (b, 0, 0)),
        out_shape=jax.ShapeDtypeStruct((b_pad, 1, c_pad), jnp.float32),
        compiler_params=pltpu.CompilerParams(
            dimension_semantics=("parallel",)),
    )(feats_p, mask_p, w_stack, shift_stack)

    new_points = jnp.transpose(pooled[:B, :, :c_last], (0, 2, 1))  # [B, C_last, 1]
    new_xyz_out = jnp.transpose(new_xyz, (0, 2, 1))                # [B, 3, 1]
    return new_xyz_out, new_points


def _reference_forward(xyz, points, mask, layer_params):
    """Plain-JAX replica of the PyTorch forward (group_all=True, eval-mode BN)."""
    xyz_b = jnp.transpose(xyz, (0, 2, 1))
    new_xyz = jnp.mean(xyz_b, axis=1, keepdims=True)
    x = jnp.concatenate([xyz_b - new_xyz, jnp.transpose(points, (0, 2, 1))], -1)
    x = jnp.transpose(x, (0, 2, 1))[..., None]  # NCHW: [B, C, N, 1]
    for lp in layer_params:
        w = lp["weight"][:, :, None, None]
        y = jax.lax.conv_general_dilated(
            x, w, (1, 1), "VALID", dimension_numbers=("NCHW", "OIHW", "NCHW"))
        y = y + lp["bias"][None, :, None, None]
        y = (lp["gamma"][None, :, None, None] * (y - lp["mean"][None, :, None, None])
             / jnp.sqrt(lp["var"][None, :, None, None] + 1e-5)
             + lp["beta"][None, :, None, None])
        x = jnp.maximum(y, 0.0)
    xm = x * mask + (1 - mask) * jnp.finfo(x.dtype).min
    pooled = jnp.max(xm, axis=2)                 # [B, C, 1]
    return jnp.transpose(new_xyz, (0, 2, 1)), pooled


if __name__ == "__main__":
    key = jax.random.PRNGKey(0)
    B, N, D = 2, 16, 5
    in_channel = 3 + D          # module in_channel (xyz + point features)
    mlp = [16, 32]              # PointNetSetAbstraction(mlp=[16, 32], group_all=True)

    keys = jax.random.split(key, 4)
    xyz = jax.random.normal(keys[0], (B, 3, N), jnp.float32)
    points = jax.random.normal(keys[1], (B, D, N), jnp.float32)
    # deterministic mask: first 12 of 16 points are valid
    valid = (jnp.arange(N) < 12).astype(jnp.float32)
    mask = jnp.broadcast_to(valid[None, None, :, None], (B, 1, N, 1))

    # deterministic synthetic parameters (Conv2d 1x1 weights + BN running stats)
    layer_params = []
    last = in_channel
    wkeys = jax.random.split(keys[2], len(mlp))
    for j, out_c in enumerate(mlp):
        layer_params.append(dict(
            weight=0.1 * jax.random.normal(wkeys[j], (out_c, last), jnp.float32),
            bias=0.01 * jnp.arange(out_c, dtype=jnp.float32),
            gamma=1.0 + 0.05 * jnp.arange(out_c, dtype=jnp.float32),
            beta=0.02 * jnp.arange(out_c, dtype=jnp.float32),
            mean=0.03 * jnp.arange(out_c, dtype=jnp.float32),
            var=1.0 + 0.04 * jnp.arange(out_c, dtype=jnp.float32),
        ))
        last = out_c

    ref_xyz, ref_pts = _reference_forward(xyz, points, mask, layer_params)

    # f32 matmul path: must match the f32 reference tightly.
    new_xyz, new_points = pointnet_set_abstraction(
        xyz, points, mask, layer_params, compute_dtype=jnp.float32)
    jax.block_until_ready((new_xyz, new_points))
    assert new_xyz.shape == (B, 3, 1) and new_points.shape == (B, mlp[-1], 1)
    assert jnp.allclose(new_xyz, ref_xyz, atol=1e-5)
    assert jnp.allclose(new_points, ref_pts, atol=1e-4)

    # bf16 matmul path (MXU-native on v6e/v7x); affine/mask/max stay f32.
    _, new_points_bf16 = pointnet_set_abstraction(
        xyz, points, mask, layer_params, compute_dtype=jnp.bfloat16)
    jax.block_until_ready(new_points_bf16)
    assert jnp.allclose(new_points_bf16, ref_pts, atol=3e-2, rtol=3e-2)

    print("KERNEL_OK")
</pallas_src>

<mosaic_0001>
module attributes {stable_mosaic.version = 11 : i64} {
  func.func @kernel(%arg0: i32, %arg1: memref<1x16x128xf32, #tpu.memory_space<vmem>>, %arg2: memref<1x16x1xf32, #tpu.memory_space<vmem>>, %arg3: memref<2x128x128xf32, #tpu.memory_space<vmem>>, %arg4: memref<2x128xf32, #tpu.memory_space<vmem>>, %arg5: memref<1x1x128xf32, #tpu.memory_space<vmem>>) attributes {dimension_semantics = [#tpu.dimension_semantics<parallel>], iteration_bounds = array<i64: 2>, scalar_prefetch = 0 : i64, scratch_operands = 0 : i64, tpu.core_type = #tpu.core_type<tc>, window_params = [{transform_indices = @transform_0, window_bounds = array<i64: 1, 16, 128>}, {transform_indices = @transform_1, window_bounds = array<i64: 1, 16, 1>}, {pipeline_mode = #tpu.pipeline_mode<synchronous>, transform_indices = @transform_2, window_bounds = array<i64: 2, 128, 128>}, {pipeline_mode = #tpu.pipeline_mode<synchronous>, transform_indices = @transform_3, window_bounds = array<i64: 2, 128>}, {transform_indices = @transform_4, window_bounds = array<i64: 1, 1, 128>}]} {
    %c0 = arith.constant 0 : index
    %c0_0 = arith.constant 0 : index
    %c0_1 = arith.constant 0 : index
    %0 = vector.load %arg1[%c0, %c0_0, %c0_1] : memref<1x16x128xf32, #tpu.memory_space<vmem>>, vector<1x16x128xf32>
    %1 = vector.shape_cast %0 : vector<1x16x128xf32> to vector<16x128xf32>
    %c0_2 = arith.constant 0 : index
    %c0_3 = arith.constant 0 : index
    %c0_4 = arith.constant 0 : index
    %2 = vector.load %arg3[%c0_2, %c0_3, %c0_4] : memref<2x128x128xf32, #tpu.memory_space<vmem>>, vector<1x128x128xf32>
    %3 = vector.shape_cast %2 : vector<1x128x128xf32> to vector<128x128xf32>
    %cst = arith.constant dense<0.000000e+00> : vector<16x128xf32>
    %4 = tpu.matmul %1, %3, %cst {dimension_numbers = #tpu.dot_dimension_numbers<[1], [0], [0], [1], [0, 0, 1, 1], [], []>} : vector<16x128xf32>, vector<128x128xf32>, vector<16x128xf32> -> vector<16x128xf32>
    %c0_5 = arith.constant 0 : index
    %c0_6 = arith.constant 0 : index
    %5 = vector.load %arg4[%c0_5, %c0_6] : memref<2x128xf32, #tpu.memory_space<vmem>>, vector<1x128xf32>
    %6 = vector.broadcast %5 : vector<1x128xf32> to vector<16x128xf32>
    %7 = arith.addf %4, %6 : vector<16x128xf32>
    %cst_7 = arith.constant 0.000000e+00 : f32
    %8 = vector.broadcast %cst_7 : f32 to vector<16x128xf32>
    %9 = arith.maximumf %7, %8 : vector<16x128xf32>
    %c1 = arith.constant 1 : index
    %c0_8 = arith.constant 0 : index
    %c0_9 = arith.constant 0 : index
    %10 = vector.load %arg3[%c1, %c0_8, %c0_9] : memref<2x128x128xf32, #tpu.memory_space<vmem>>, vector<1x128x128xf32>
    %11 = vector.shape_cast %10 : vector<1x128x128xf32> to vector<128x128xf32>
    %cst_10 = arith.constant dense<0.000000e+00> : vector<16x128xf32>
    %12 = tpu.matmul %9, %11, %cst_10 {dimension_numbers = #tpu.dot_dimension_numbers<[1], [0], [0], [1], [0, 0, 1, 1], [], []>} : vector<16x128xf32>, vector<128x128xf32>, vector<16x128xf32> -> vector<16x128xf32>
    %c1_11 = arith.constant 1 : index
    %c0_12 = arith.constant 0 : index
    %13 = vector.load %arg4[%c1_11, %c0_12] : memref<2x128xf32, #tpu.memory_space<vmem>>, vector<1x128xf32>
    %14 = vector.broadcast %13 : vector<1x128xf32> to vector<16x128xf32>
    %15 = arith.addf %12, %14 : vector<16x128xf32>
    %cst_13 = arith.constant 0.000000e+00 : f32
    %16 = vector.broadcast %cst_13 : f32 to vector<16x128xf32>
    %17 = arith.maximumf %15, %16 : vector<16x128xf32>
    %18 = vector.shape_cast %17 : vector<16x128xf32> to vector<1x16x128xf32>
    %c0_14 = arith.constant 0 : index
    %c0_15 = arith.constant 0 : index
    %c0_16 = arith.constant 0 : index
    %19 = vector.load %arg2[%c0_14, %c0_15, %c0_16] : memref<1x16x1xf32, #tpu.memory_space<vmem>>, vector<1x16x1xf32>
    %cst_17 = arith.constant 0.000000e+00 : f32
    %20 = vector.broadcast %cst_17 : f32 to vector<1x16x1xf32>
    %21 = arith.cmpf one, %19, %20 : vector<1x16x1xf32>
    %cst_18 = arith.constant -3.40282347E+38 : f32
    %22 = vector.shape_cast %21 : vector<1x16x1xi1> to vector<1x16x1xi1>
    %23 = vector.broadcast %22 : vector<1x16x1xi1> to vector<1x16x128xi1>
    %24 = vector.broadcast %cst_18 : f32 to vector<1x16x128xf32>
    %25 = arith.select %23, %18, %24 : vector<1x16x128xi1>, vector<1x16x128xf32>
    %cst_19 = arith.constant dense<0xFF800000> : vector<1x128xf32>
    %26 = vector.multi_reduction <maximumf>, %25, %cst_19 [1] : vector<1x16x128xf32> to vector<1x128xf32>
    %27 = vector.shape_cast %26 : vector<1x128xf32> to vector<1x1x128xf32>
    %c0_20 = arith.constant 0 : index
    %c0_21 = arith.constant 0 : index
    %c0_22 = arith.constant 0 : index
    %28 = vector.load %arg5[%c0_20, %c0_21, %c0_22] : memref<1x1x128xf32, #tpu.memory_space<vmem>>, vector<1x1x128xf32>
    tpu.vector_store %arg5[%c0_20, %c0_21, %c0_22], %27 {strides = array<i32>} : memref<1x1x128xf32, #tpu.memory_space<vmem>>, vector<1x1x128xf32>,
    return
  }
  func.func @transform_0(%arg0: i32) -> (i32, i32, i32) {
    %c0_i32 = arith.constant 0 : i32
    %c0_i32_0 = arith.constant 0 : i32
    %c0_i32_1 = arith.constant 0 : i32
    return %arg0, %c0_i32, %c0_i32_0 : i32, i32, i32
  }
  func.func @transform_1(%arg0: i32) -> (i32, i32, i32) {
    %c0_i32 = arith.constant 0 : i32
    %c0_i32_0 = arith.constant 0 : i32
    %c0_i32_1 = arith.constant 0 : i32
    return %arg0, %c0_i32, %c0_i32_0 : i32, i32, i32
  }
  func.func @transform_2(%arg0: i32) -> (i32, i32, i32) {
    %c0_i32 = arith.constant 0 : i32
    %c0_i32_0 = arith.constant 0 : i32
    %c0_i32_1 = arith.constant 0 : i32
    %c0_i32_2 = arith.constant 0 : i32
    return %c0_i32, %c0_i32_0, %c0_i32_1 : i32, i32, i32
  }
  func.func @transform_3(%arg0: i32) -> (i32, i32) {
    %c0_i32 = arith.constant 0 : i32
    %c0_i32_0 = arith.constant 0 : i32
    %c0_i32_1 = arith.constant 0 : i32
    return %c0_i32, %c0_i32_0 : i32, i32
  }
  func.func @transform_4(%arg0: i32) -> (i32, i32, i32) {
    %c0_i32 = arith.constant 0 : i32
    %c0_i32_0 = arith.constant 0 : i32
    %c0_i32_1 = arith.constant 0 : i32
    return %arg0, %c0_i32, %c0_i32_0 : i32, i32, i32
  }
}

</mosaic_0001>

<bundles_post_ra>
// kernel: tpu_custom_call.1
= control target key start
LH: loop header
LB: loop body
LE: loop exit
PB: predicated region body
PF: predicated region fallthrough
CT: control target
= control target key end

     0   :  { %9 = vsyncpa [#allocation3], 0  ;;  %s777_s0 = inlined_call_operand.vmem [shape: f32[2,16,128], index: 0, kind: input, shape index: {}]   ;;  %s778_s1 = inlined_call_operand.vmem [shape: f32[2,16,1], index: 1, kind: input, shape index: {}]   ;;  %s779_s2 = inlined_call_operand.hbm [shape: f32[2,128,128], index: 2, kind: input, shape index: {}]   ;;  %s780_s3 = inlined_call_operand.vmem [shape: f32[2,128], index: 3, kind: input, shape index: {}]   ;;  %s781_s4 = inlined_call_operand.hbm [shape: f32[2,1,128], index: 4, kind: output, shape index: {}]  }
   0x1   :  { %10 = vsyncpa [#allocation4], 0 }
   0x2   :  { %12 = vsyncpa [#allocation4 + $0x1], 0  ;;  %s666_s15 = smov 0   ;;  %s668_s16 = smov 0  }
   0x3   :  { %s670_s17 = smov 0   ;;  %s672_s18 = smov 0  }
   0x4 LB: > { %s687_s19 = sadd.s32 4294967295, %s635_s18   ;;  %s437_s20 = sadd.s32 4294967294, %s635_s18   ;;  %s635_s18 = sphi %s672_s18, %s787_s18   ;;  %s631_s17 = sphi %s670_s17, %s786_s17   ;;  %s627_s16 = sphi %s668_s16, %s785_s16   ;;  %s623_s15 = sphi %s666_s15, %s784_s15  }
   0x5   : > { %s691_s21 = sadd.s32 1, %s635_s18   ;;  %s119_s22 = sadd.s32 1, %s631_s17 }
   0x6   : > { %s116_s23 = ssub.s32 %s635_s18, %s691_s21  ;;  %p129_p0 = scmp.ne.s32.totalorder %s631_s17, %s627_s16 }
   0x7   : > { %p117_p1 = scmp.eq.s32.totalorder %s116_s23, 0  ;;  %p130_p2 = scmp.eq.s32.totalorder %s687_s19, 1 }
   0x8   : > { %p135_p3 = scmp.ne.s32.totalorder %s627_s16, %s623_s15  ;;  %p136_p4 = scmp.eq.s32.totalorder %s437_s20, 1 }
   0x9   : > { %s702_s24 = scalar_select %p117_p1, %s631_s17, %s119_s22  }
   0xa   : > { %p704_p5 = por %p130_p2, %p129_p0  ;;  %p708_p6 = por %p136_p4, %p135_p3 }
   0xb   : > { %p438_p7 = scmp.ge.s32.totalorder %s635_s18, 1  ;;  %p143_p8 = scmp.lt.s32.totalorder %s635_s18, 3 }
   0xc   : > { %p497_p9 = scmp.eq.s32.totalorder %s687_s19, 0  ;;  %s154_s29 = sshll.u32 %s779_s2, 4  ;;  %s155_s29 = int_to_ptr.hbm [resolvable:$true] %s154_s29 }
   0xd   : > { %p144_p10 = pnand %p438_p7, %p143_p8  ;;  %s637_s30 = smov [#allocation2]  }
   0xe   : > { %s156_s5 = sshll.u32 %s637_s30, 4  ;;  %s638_s6 = smov 128   ;;  %s157_s5 = int_to_ptr.vmem [resolvable:$true] %s156_s5 }
   0xf   : > { %p489_p11 = pneg %p144_p10  ;;  %s639_s7 = smov 8  }
  0x10   : > { %191 = sbr.rel (%p144_p10) target bundleno = 344 (0x158), region = 36 }
  0x11   : > { %p490_p12 = pnand %p497_p9, %p489_p11 }
  0x13   : > { %492 = dma.hbm_to_vmem [thread:$0]  (!%p490_p12), %s155_s29, 4096, %s157_s5, [#allocation3], %s638_s6, %s638_s6, %s639_s7  }
  0x15   : > { %614 = dma.done.wait (%p497_p9), [#allocation3], 4096  }
  0x16   : > { %616 = vsyncadd (%p497_p9), [#allocation3], 4294963200  ;;  %v249_v0 = vld [vmem:[#allocation2 + $0x78] sm:$0xff]  ;;  %v248_v1 = vld [vmem:[#allocation2 + $0x70] sm:$0xff]  ;;  %p222_p13 = scmp.lt.s32.totalorder %s687_s19, 1  ;;  %v640_v35 = vmov 0   ;;  %s354_s6 = scalar_lea.hbm %s781_s4, %s687_s19 }
  0x17   : > { %451 = vmatpush.msra.mxu2 %v249_v0  ;;  %252 = vmatpush.msra.mxu0 %v249_v0  ;;  %v247_v2 = vld [vmem:[#allocation2 + $0x68] sm:$0xff]  ;;  %v246_v3 = vld [vmem:[#allocation2 + $0x60] sm:$0xff]  ;;  %v245_v4 = vld [vmem:[#allocation2 + $0x58] sm:$0xff]  ;;  %s220_s29 = sand.u32 1, %s627_s16  }
  0x18   : > { %v293_v5 = vld [vmem:[#allocation2 + $0xf8] sm:$0xff]  ;;  %v292_v6 = vld [vmem:[#allocation2 + $0xf0] sm:$0xff]  ;;  %v291_v8 = vld [vmem:[#allocation2 + $0xe8] sm:$0xff]  ;;  %s726_s8 = scalar_select %p222_p13, %s687_s19, 1  ;;  %536 = vset.pattern.permute.xlu0 %v640_v35 }
  0x19   : > { %452 = vmatpush.msra.mxu2 %v248_v1  ;;  %253 = vmatpush.msra.mxu0 %v248_v1  ;;  %v244_v7 = vld [vmem:[#allocation2 + $0x50] sm:$0xff]  ;;  %v243_v9 = vld [vmem:[#allocation2 + $0x48] sm:$0xff]  ;;  %v290_v10 = vld [vmem:[#allocation2 + $0xe0] sm:$0xff]  ;;  %s221_s7 = scalar_lea.vmem [#allocation5], %s220_s29  ;;  %s346_s10 = scalar_lea.sflag [#allocation4], %s220_s29 }
  0x1a   : > { %296 = vmatpush.msra.mxu1 %v293_v5  ;;  %467 = vmatpush.msra.mxu3 %v293_v5  ;;  %v242_v11 = vld [vmem:[#allocation2 + $0x40] sm:$0xff]  ;;  %v289_v12 = vld [vmem:[#allocation2 + $0xd8] sm:$0xff]  ;;  %v288_v14 = vld [vmem:[#allocation2 + $0xd0] sm:$0xff]  ;;  %s449_s9 = sshll.u32 %s726_s8, 4  ;;  %s356_s8 = sshll.u32 %s221_s7, 4  ;;  %s357_s8 = int_to_ptr.vmem [resolvable:$true] %s356_s8 }
  0x1b   : > { %453 = vmatpush.msra.mxu2 %v247_v2  ;;  %254 = vmatpush.msra.mxu0 %v247_v2  ;;  %v241_v13 = vld [vmem:[#allocation2 + $0x38] sm:$0xff]  ;;  %v240_v15 = vld [vmem:[#allocation2 + $0x30] sm:$0xff]  ;;  %v287_v16 = vld [vmem:[#allocation2 + $0xc8] sm:$0xff]  ;;  %s226_s12 = scalar_lea.vmem %s777_s0, %s449_s9  ;;  %s231_s20 = scalar_lea.vmem %s778_s1, %s449_s9 }
  0x1c   : > { %297 = vmatpush.msra.mxu1 %v292_v6  ;;  %468 = vmatpush.msra.mxu3 %v292_v6  ;;  %v239_v17 = vld [vmem:[#allocation2 + $0x28] sm:$0xff]  ;;  %v286_v18 = vld [vmem:[#allocation2 + $0xc0] sm:$0xff]  ;;  %v285_v20 = vld [vmem:[#allocation2 + $0xb8] sm:$0xff]  ;;  %s358_s9 = sshll.u32 %s354_s6, 4  ;;  %s589_s19 = scalar_lea.hbm %s781_s4, 2  ;;  %s359_s9 = int_to_ptr.hbm [resolvable:$true] %s358_s9 }
  0x1d   : > { %454 = vmatpush.msra.mxu2 %v246_v3  ;;  %255 = vmatpush.msra.mxu0 %v246_v3  ;;  %v238_v19 = vld [vmem:[#allocation2 + $0x20] sm:$0xff]  ;;  %v237_v21 = vld [vmem:[#allocation2 + $0x18] sm:$0xff]  ;;  %v284_v22 = vld [vmem:[#allocation2 + $0xb0] sm:$0xff]  ;;  %s583_s11 = sshra.s32 %s359_s9, 4  ;;  %s584_s11 = int_to_ptr.hbm [resolvable:$true] %s583_s11 }
  0x1e   : > { %298 = vmatpush.msra.mxu1 %v291_v8  ;;  %469 = vmatpush.msra.mxu3 %v291_v8  ;;  %v236_v23 = vld [vmem:[#allocation2 + $0x10] sm:$0xff]  ;;  %v283_v24 = vld [vmem:[#allocation2 + $0xa8] sm:$0xff]  ;;  %v282_v26 = vld [vmem:[#allocation2 + $0xa0] sm:$0xff]  ;;  %p590_p3 = scmp.lt.s32.totalorder %s584_s11, %s781_s4 }
  0x1f   : > { %455 = vmatpush.msra.mxu2 %v245_v4  ;;  %256 = vmatpush.msra.mxu0 %v245_v4  ;;  %v235_v25 = vld [vmem:[#allocation2 + $0x8] sm:$0xff]  ;;  %v234_v27 = vld [vmem:[#allocation2] sm:$0xff]  ;;  %v281_v30 = vld [vmem:[#allocation2 + $0x98] sm:$0xff] }
  0x20   : > { %299 = vmatpush.msra.mxu1 %v290_v10  ;;  %470 = vmatpush.msra.mxu3 %v290_v10  ;;  %v233_v28 = vld [vmem:[%s226_s12 + $0x8] sm:$0xff]  ;;  %v232_v29 = vld [vmem:[%s226_s12] sm:$0xff]  ;;  %v280_v31 = vld [vmem:[#allocation2 + $0x90] sm:$0xff]  ;;  %s585_s12 = scalar_lea.hbm %s584_s11, 1 }
  0x21   : > { %456 = vmatpush.msra.mxu2 %v244_v7  ;;  %257 = vmatpush.msra.mxu0 %v244_v7  ;;  %v279_v32 = vld [vmem:[#allocation2 + $0x88] sm:$0xff]  ;;  %v278_v33 = vld [vmem:[#allocation2 + $0x80] sm:$0xff]  ;;  %p586_p0 = scmp.ne.s32.totalorder %s584_s11, %s585_s12  ;;  %p591_p4 = scmp.lt.s32.totalorder %s589_s19, %s585_s12 }
  0x22   : > { %300 = vmatpush.msra.mxu1 %v289_v12  ;;  %471 = vmatpush.msra.mxu3 %v289_v12  ;;  %v321_v34 = vld [vmem:[%s231_s20] sm:$0xff]  ;;  %v322_v37 = vld [vmem:[%s231_s20 + $0x8] sm:$0xff] }
  0x23   : > { %457 = vmatpush.msra.mxu2 %v243_v9  ;;  %258 = vmatpush.msra.mxu0 %v243_v9  ;;  %vm323_vm0 = vcmp.ne.f32.partialorder %v321_v34, 0.0  ;;  %vm324_vm1 = vcmp.ne.f32.partialorder %v322_v37, 0.0  ;;  %v537_v39 = vld [vmem:[%s780_s3] ss:$0 sm:$0xff]  ;;  %v538_v47 = vld [vmem:[%s780_s3 + $0x1] ss:$0 sm:$0xff]  ;;  %p587_p1 = pnand %p586_p0, %p704_p5  ;;  %p592_p7 = por %p591_p4, %p590_p3 }
  0x24   : > { %301 = vmatpush.msra.mxu1 %v288_v14  ;;  %472 = vmatpush.msra.mxu3 %v288_v14  ;;  %v325_v36 = vsel %vm323_vm0, 1, %v640_v35  ;;  %v326_v38 = vsel %vm324_vm1, 1, %v640_v35 }
  0x25   : > { %458 = vmatpush.msra.mxu2 %v242_v11  ;;  %259 = vmatpush.msra.mxu0 %v242_v11  ;;  %p588_p2 = pneg %p587_p1 }
  0x26   : > { %302 = vmatpush.msra.mxu1 %v287_v16  ;;  %473 = vmatpush.msra.mxu3 %v287_v16 }
  0x27   : > { %459 = vmatpush.msra.mxu2 %v241_v13  ;;  %260 = vmatpush.msra.mxu0 %v241_v13  ;;  %p593_p8 = pnand %p592_p7, %p588_p2 }
  0x28   : > { %303 = vmatpush.msra.mxu1 %v286_v18  ;;  %474 = vmatpush.msra.mxu3 %v286_v18 }
  0x29   : > { %460 = vmatpush.msra.mxu2 %v240_v15  ;;  %261 = vmatpush.msra.mxu0 %v240_v15 }
  0x2a   : > { %304 = vmatpush.msra.mxu1 %v285_v20  ;;  %475 = vmatpush.msra.mxu3 %v285_v20 }
  0x2b   : > { %461 = vmatpush.msra.mxu2 %v239_v17  ;;  %262 = vmatpush.msra.mxu0 %v239_v17 }
  0x2c   : > { %305 = vmatpush.msra.mxu1 %v284_v22  ;;  %476 = vmatpush.msra.mxu3 %v284_v22 }
  0x2d   : > { %462 = vmatpush.msra.mxu2 %v238_v19  ;;  %263 = vmatpush.msra.mxu0 %v238_v19 }
  0x2e   : > { %306 = vmatpush.msra.mxu1 %v283_v24  ;;  %477 = vmatpush.msra.mxu3 %v283_v24 }
  0x2f   : > { %463 = vmatpush.msra.mxu2 %v237_v21  ;;  %264 = vmatpush.msra.mxu0 %v237_v21 }
  0x30   : > { %307 = vmatpush.msra.mxu1 %v282_v26  ;;  %478 = vmatpush.msra.mxu3 %v282_v26 }
  0x31   : > { %464 = vmatpush.msra.mxu2 %v236_v23  ;;  %265 = vmatpush.msra.mxu0 %v236_v23 }
  0x32   : > { %308 = vmatpush.msra.mxu1 %v281_v30  ;;  %479 = vmatpush.msra.mxu3 %v281_v30 }
  0x33   : > { %465 = vmatpush.msra.mxu2 %v235_v25  ;;  %266 = vmatpush.msra.mxu0 %v235_v25 }
  0x34   : > { %309 = vmatpush.msra.mxu1 %v280_v31  ;;  %480 = vmatpush.msra.mxu3 %v280_v31 }
  0x35   : > { %466 = vmatpush.msra.mxu2 %v234_v27  ;;  %267 = vmatpush.msra.mxu0 %v234_v27 }
  0x36   : > { %271 = vmatmul.f32.vlgmr.msra.gmra.mxu2 %v233_v28  ;;  %268 = vmatmul.f32.vlgmr.msra.gmra.mxu0 %v232_v29 }
  0x37   : > { %310 = vmatpush.msra.mxu1 %v279_v32  ;;  %481 = vmatpush.msra.mxu3 %v279_v32 }
  0x38   : > { %328 = vperm.xlu0 %536, %v325_v36  }
  0x39   : > { %311 = vmatpush.msra.mxu1 %v278_v33  ;;  %482 = vmatpush.msra.mxu3 %v278_v33 }
  0x40   : > { %331 = vperm.xlu0 %536, %v326_v38  }
  0xaa   : > { %v329_v46 = vpop.permute.xlu0 %328 }
  0xab   : > { %vm333_vm2 = vcmp.eq.s32.totalorder %v329_v46, 1 }
  0xb2   : > { %v332_v52 = vpop.permute.xlu0 %331 }
  0xb3   : > { %v269_v40 = vpop.f32.mrf.mxu0  ;;  %vm334_vm3 = vcmp.eq.s32.totalorder %v332_v52, 1 }
  0xb4   : > { %v270_v41 = vadd.f32 %v537_v39, %v269_v40 }
  0xb6   : > { %v275_v42 = vmax.f32 %v270_v41, 0.0 }
  0xb8   : > { %312 = vmatmul.f32.vlgmr.msra.gmra.mxu1 %v275_v42 }
  0xb9   : > { %v272_v43 = vpop.f32.mrf.mxu2 }
  0xba   : > { %v273_v44 = vadd.f32 %v537_v39, %v272_v43 }
  0xbc   : > { %v276_v45 = vmax.f32 %v273_v44, 0.0 }
  0xbe   : > { %315 = vmatmul.f32.vlgmr.msra.gmra.mxu3 %v276_v45 }
 0x135   : > { %v313_v48 = vpop.f32.mrf.mxu1 }
 0x136   : > { %v314_v49 = vadd.f32 %v538_v47, %v313_v48 }
 0x138   : > { %v319_v51 = vmax.f32 %v314_v49, 0.0 }
 0x13a   : > { %v335_v55 = vsel %vm333_vm2, %v319_v51, -3.4028235e+38 }
 0x141   : > { %v316_v50 = vpop.f32.mrf.mxu3 }
 0x142   : > { %v317_v53 = vadd.f32 %v538_v47, %v316_v50 }
 0x144   : > { %v320_v54 = vmax.f32 %v317_v53, 0.0 }
 0x146   : > { %v336_v56 = vsel %vm334_vm3, %v320_v54, -3.4028235e+38 }
 0x147   : > { %v337_v57 = vmax.f32 %v335_v55, %v336_v56 }
 0x149   : > { %v338_v58 = vrot.slane %v337_v57, 4 }
 0x14b   : > { %v339_v59 = vmax.f32 %v337_v57, %v338_v58 }
 0x14d   : > { %v340_v60 = vrot.slane %v339_v59, 2 }
 0x14f   : > { %v341_v61 = vmax.f32 %v339_v59, %v340_v60 }
 0x151   : > { %v342_v62 = vrot.slane %v341_v61, 1 }
 0x153   : > { %v343_v63 = vmax.f32 %v341_v61, %v342_v62 }
 0x155   : > { %344 = vst [vmem:[%s221_s7] sm:$0x1] %v343_v63 }
 0x156   : > { %596 = shalt.err (!%p593_p8)
}
 0x157   : > { %487 = dma.vmem_to_hbm [thread:$0]  (%p704_p5), %s357_s8, 16, %s359_s9, %s346_s10  }
 0x158 PF: > { %p499_p9 = scmp.ge.s32.totalorder %s635_s18, 2  ;;  %s370_s23 = sand.u32 1, %s623_s15  }
 0x159   : > { %s371_s27 = scalar_lea.sflag [#allocation4], %s370_s23 }
 0x15a   : > { %p494_p10 = pnand %p499_p9, %p708_p6 }
 0x15c   : > { %p495_p11 = pneg %p494_p10 }
 0x15e   : > { %618 = dma.done.wait (%p495_p11), %s371_s27, 16  }
 0x15f   : > { %620 = vsyncadd (%p495_p11), %s371_s27, 4294967280  ;;  %p15_p12 = scmp.ge.s32.totalorder %s691_s21, 4   ;;  %s784_s15 = smov %s627_s16 }
 0x160   : > { %s785_s16 = smov %s631_s17  ;;  %s786_s17 = smov %s702_s24 }
 0x161   : > { %s787_s18 = smov %s691_s21  ;;  %17 = sbr.rel (!%p15_p12) target bundleno = 4 (0x4), region = 80 }
 0x166   :  { %376 = vsyncpa [#allocation3], 1 }
 0x167   :  { %378 = vsyncpa [#allocation3 + $0x1], 1 }
 0x168   :  { %379 = vsyncpa [#allocation4], 1 }
 0x169   :  { %381 = vsyncpa [#allocation4 + $0x1], 1 }

</bundles_post_ra>
